<compile_context>
chip_gen: v7x
topology: tpu7x:2x2x1
jax: 0.10.0
libtpu: 0.0.40
codegen_flags: <defaults>
</compile_context>

<pallas_src>
import math

import jax
import jax.numpy as jnp
from jax.experimental import pallas as pl
from jax.experimental.pallas import tpu as pltpu


def _make_lrtf_kernel(n_mod, rank, output_dim):
    """Kernel specialized to `n_mod` modalities, `rank`, `output_dim`.

    Ref order:
      [fusion_weights (SMEM, (R,)), fusion_bias (1, O),
       m_1..m_n           each (Bblk, D_i),
       fw_1..fw_n         each (D_i, R*O)   (factor rows 1..D, rank-major cols),
       fb_1..fb_n         each (1, R*O)     (factor row 0 = constant term),
       out (Bblk, O)]
    """

    def kernel(*refs):
        w_ref = refs[0]                               # (R,) f32 in SMEM
        b_ref = refs[1]                               # (1, O)
        m_refs = refs[2:2 + n_mod]                    # (Bblk, D_i)
        fw_refs = refs[2 + n_mod:2 + 2 * n_mod]       # (D_i, R*O)
        fb_refs = refs[2 + 2 * n_mod:2 + 3 * n_mod]   # (1, R*O)
        o_ref = refs[2 + 3 * n_mod]                   # (Bblk, O)

        # One lane-dense MXU matmul per modality; the factor's row 0 is the
        # constant term (replaces the ones column of the PyTorch module).
        fused = (jnp.dot(m_refs[0][...], fw_refs[0][...],
                         preferred_element_type=jnp.float32)
                 + fb_refs[0][...])
        for m_ref, fw_ref, fb_ref in zip(m_refs[1:], fw_refs[1:], fb_refs[1:]):
            fused = fused * (jnp.dot(m_ref[...], fw_ref[...],
                                     preferred_element_type=jnp.float32)
                             + fb_ref[...])

        # Weighted rank reduction on the VPU:
        #   out[b, o] = sum_r w[r] * fused[b, r*O + o]   (+ bias)
        acc = w_ref[0] * fused[:, 0:output_dim]
        for r in range(1, rank):
            acc = acc + w_ref[r] * fused[:, r * output_dim:(r + 1) * output_dim]

        o_ref[...] = (acc + b_ref[...]).astype(o_ref.dtype)

    return kernel


def low_rank_tensor_fusion(modalities, factors, fusion_weights, fusion_bias,
                           output_dim, rank, flatten=True, block_batch=256):
    """JAX wrapper reproducing LowRankTensorFusion.forward."""
    batch = modalities[0].shape[0]
    n_mod = len(modalities)

    # Glue: flatten each modality (no ones column needed any more).
    flat = []
    for m in modalities:
        if flatten:
            m = m.reshape(batch, -1)
        flat.append(m)

    # Re-layout each factor (R, D+1, O):
    #   rows 1..D -> weight matrix fw: (D, R*O)   (rank-major columns)
    #   row 0     -> constant term fb: (1, R*O)
    fws, fbs = [], []
    for f in factors:
        d = f.shape[1] - 1
        fw = jnp.transpose(f[:, 1:, :], (1, 0, 2)).reshape(d, rank * output_dim)
        fb = f[:, 0, :].reshape(1, rank * output_dim)
        fws.append(fw)
        fbs.append(fb)

    weights_1d = fusion_weights.reshape(rank).astype(jnp.float32)  # (R,) for SMEM

    # Single "parallel" batch axis (sharded across TensorCores on v7x).
    block_b = batch if batch <= block_batch else block_batch
    grid = (pl.cdiv(batch, block_b),)

    in_specs = [
        pl.BlockSpec(memory_space=pltpu.SMEM),             # fusion weights (R,)
        pl.BlockSpec((1, output_dim), lambda i: (0, 0)),   # fusion bias
    ]
    for m in flat:                                         # modalities: batch-tiled
        d = m.shape[1]
        in_specs.append(pl.BlockSpec((block_b, d), lambda i: (i, 0)))
    for fw in fws:                                         # factor weights: resident
        d = fw.shape[0]
        in_specs.append(pl.BlockSpec((d, rank * output_dim), lambda i: (0, 0)))
    for _ in fbs:                                          # factor constant rows
        in_specs.append(pl.BlockSpec((1, rank * output_dim), lambda i: (0, 0)))

    out_specs = pl.BlockSpec((block_b, output_dim), lambda i: (i, 0))

    kernel = _make_lrtf_kernel(n_mod, rank, output_dim)

    grid_spec = pltpu.PrefetchScalarGridSpec(
        num_scalar_prefetch=0,
        grid=grid,
        in_specs=in_specs,
        out_specs=out_specs,
        scratch_shapes=[],
    )

    out = pl.pallas_call(
        kernel,
        out_shape=jax.ShapeDtypeStruct((batch, output_dim), modalities[0].dtype),
        grid_spec=grid_spec,
        compiler_params=pltpu.CompilerParams(
            dimension_semantics=("parallel",)),
    )(weights_1d, fusion_bias, *flat, *fws, *fbs)

    # Matches output.view(-1, output_dim) in the PyTorch module.
    return out.reshape(-1, output_dim)


# ----------------------- deterministic parameter init -----------------------

def _xavier_normal(key, shape):
    """Match torch.nn.init.xavier_normal_ fan computation."""
    if len(shape) == 2:
        fan_in, fan_out = shape[1], shape[0]
    else:
        receptive = 1
        for s in shape[2:]:
            receptive *= s
        fan_in = shape[1] * receptive
        fan_out = shape[0] * receptive
    std = math.sqrt(2.0 / float(fan_in + fan_out))
    return std * jax.random.normal(key, shape, dtype=jnp.float32)


def init_params(key, input_dims, output_dim, rank):
    keys = jax.random.split(key, len(input_dims) + 1)
    factors = [
        _xavier_normal(keys[i], (rank, d + 1, output_dim))
        for i, d in enumerate(input_dims)
    ]
    fusion_weights = _xavier_normal(keys[-1], (1, rank))
    fusion_bias = jnp.zeros((1, output_dim), dtype=jnp.float32)
    return factors, fusion_weights, fusion_bias


# ------------------------------ reference (JAX) ------------------------------

def lrtf_reference(modalities, factors, fusion_weights, fusion_bias,
                   output_dim, flatten=True):
    batch = modalities[0].shape[0]
    fused = 1.0
    for m, f in zip(modalities, factors):
        if flatten:
            m = m.reshape(batch, -1)
        ones = jnp.ones((batch, 1), dtype=m.dtype)
        mw = jnp.concatenate([ones, m], axis=1)            # (B, D+1)
        mf = jnp.einsum("bd,rdo->rbo", mw, f)              # (R, B, O)
        fused = fused * mf
    out = jnp.einsum("xr,rbo->bo", fusion_weights, fused) + fusion_bias
    return out.reshape(-1, output_dim)


if __name__ == "__main__":
    key = jax.random.PRNGKey(0)
    k_x1, k_x2, k_p = jax.random.split(key, 3)

    # Two modalities: one image-like (flattened in forward), one vector-like.
    batch = 2
    x1 = jax.random.normal(k_x1, (batch, 4, 8), dtype=jnp.float32)   # flatten -> 32
    x2 = jax.random.normal(k_x2, (batch, 20), dtype=jnp.float32)
    input_dims = [32, 20]
    output_dim = 32
    rank = 4          # rank * output_dim = 128 -> one full lane width

    factors, fusion_weights, fusion_bias = init_params(
        k_p, input_dims, output_dim, rank)

    out = low_rank_tensor_fusion(
        [x1, x2], factors, fusion_weights, fusion_bias, output_dim, rank,
        flatten=True)
    out = jax.block_until_ready(out)

    ref = lrtf_reference([x1, x2], factors, fusion_weights, fusion_bias,
                         output_dim, flatten=True)

    assert out.shape == (batch, output_dim), out.shape
    assert jnp.allclose(out, ref, atol=1e-5, rtol=1e-5), (
        float(jnp.max(jnp.abs(out - ref))))
    print("KERNEL_OK")
</pallas_src>

<mosaic_0001>
module attributes {stable_mosaic.version = 11 : i64} {
  func.func @kernel(%arg0: i32, %arg1: memref<4xf32, #tpu.memory_space<smem>>, %arg2: memref<1x32xf32, #tpu.memory_space<vmem>>, %arg3: memref<2x32xf32, #tpu.memory_space<vmem>>, %arg4: memref<2x20xf32, #tpu.memory_space<vmem>>, %arg5: memref<32x128xf32, #tpu.memory_space<vmem>>, %arg6: memref<20x128xf32, #tpu.memory_space<vmem>>, %arg7: memref<1x128xf32, #tpu.memory_space<vmem>>, %arg8: memref<1x128xf32, #tpu.memory_space<vmem>>, %arg9: memref<2x32xf32, #tpu.memory_space<vmem>>) attributes {dimension_semantics = [#tpu.dimension_semantics<parallel>], iteration_bounds = array<i64: 1>, scalar_prefetch = 0 : i64, scratch_operands = 0 : i64, tpu.core_type = #tpu.core_type<tc>, window_params = [{transform_indices = @transform_0, window_bounds = array<i64: 4>}, {pipeline_mode = #tpu.pipeline_mode<synchronous>, transform_indices = @transform_1, window_bounds = array<i64: 1, 32>}, {transform_indices = @transform_2, window_bounds = array<i64: 2, 32>}, {transform_indices = @transform_3, window_bounds = array<i64: 2, 20>}, {pipeline_mode = #tpu.pipeline_mode<synchronous>, transform_indices = @transform_4, window_bounds = array<i64: 32, 128>}, {pipeline_mode = #tpu.pipeline_mode<synchronous>, transform_indices = @transform_5, window_bounds = array<i64: 20, 128>}, {pipeline_mode = #tpu.pipeline_mode<synchronous>, transform_indices = @transform_6, window_bounds = array<i64: 1, 128>}, {pipeline_mode = #tpu.pipeline_mode<synchronous>, transform_indices = @transform_7, window_bounds = array<i64: 1, 128>}, {transform_indices = @transform_8, window_bounds = array<i64: 2, 32>}]} {
    %c0 = arith.constant 0 : index
    %c0_0 = arith.constant 0 : index
    %0 = vector.load %arg3[%c0, %c0_0] : memref<2x32xf32, #tpu.memory_space<vmem>>, vector<2x32xf32>
    %c0_1 = arith.constant 0 : index
    %c0_2 = arith.constant 0 : index
    %1 = vector.load %arg5[%c0_1, %c0_2] : memref<32x128xf32, #tpu.memory_space<vmem>>, vector<32x128xf32>
    %cst = arith.constant dense<0.000000e+00> : vector<2x128xf32>
    %2 = tpu.matmul %0, %1, %cst {dimension_numbers = #tpu.dot_dimension_numbers<[1], [0], [0], [1], [0, 0, 1, 1], [], []>} : vector<2x32xf32>, vector<32x128xf32>, vector<2x128xf32> -> vector<2x128xf32>
    %c0_3 = arith.constant 0 : index
    %c0_4 = arith.constant 0 : index
    %3 = vector.load %arg7[%c0_3, %c0_4] : memref<1x128xf32, #tpu.memory_space<vmem>>, vector<1x128xf32>
    %4 = vector.broadcast %3 : vector<1x128xf32> to vector<2x128xf32>
    %5 = arith.addf %2, %4 : vector<2x128xf32>
    %c0_5 = arith.constant 0 : index
    %c0_6 = arith.constant 0 : index
    %6 = vector.load %arg4[%c0_5, %c0_6] : memref<2x20xf32, #tpu.memory_space<vmem>>, vector<2x20xf32>
    %c0_7 = arith.constant 0 : index
    %c0_8 = arith.constant 0 : index
    %7 = vector.load %arg6[%c0_7, %c0_8] : memref<20x128xf32, #tpu.memory_space<vmem>>, vector<20x128xf32>
    %cst_9 = arith.constant dense<0.000000e+00> : vector<2x128xf32>
    %8 = tpu.matmul %6, %7, %cst_9 {dimension_numbers = #tpu.dot_dimension_numbers<[1], [0], [0], [1], [0, 0, 1, 1], [], []>} : vector<2x20xf32>, vector<20x128xf32>, vector<2x128xf32> -> vector<2x128xf32>
    %c0_10 = arith.constant 0 : index
    %c0_11 = arith.constant 0 : index
    %9 = vector.load %arg8[%c0_10, %c0_11] : memref<1x128xf32, #tpu.memory_space<vmem>>, vector<1x128xf32>
    %10 = vector.broadcast %9 : vector<1x128xf32> to vector<2x128xf32>
    %11 = arith.addf %8, %10 : vector<2x128xf32>
    %12 = arith.mulf %5, %11 : vector<2x128xf32>
    %c0_12 = arith.constant 0 : index
    %13 = memref.load %arg1[%c0_12] : memref<4xf32, #tpu.memory_space<smem>>
    %14 = vector.extract_strided_slice %12 {offsets = [0, 0], sizes = [2, 32], strides = [1, 1]} : vector<2x128xf32> to vector<2x32xf32>
    %15 = vector.broadcast %13 : f32 to vector<2x32xf32>
    %16 = arith.mulf %15, %14 : vector<2x32xf32>
    %c1 = arith.constant 1 : index
    %17 = memref.load %arg1[%c1] : memref<4xf32, #tpu.memory_space<smem>>
    %18 = vector.extract_strided_slice %12 {offsets = [0, 32], sizes = [2, 32], strides = [1, 1]} : vector<2x128xf32> to vector<2x32xf32>
    %19 = vector.broadcast %17 : f32 to vector<2x32xf32>
    %20 = arith.mulf %19, %18 : vector<2x32xf32>
    %21 = arith.addf %16, %20 : vector<2x32xf32>
    %c2 = arith.constant 2 : index
    %22 = memref.load %arg1[%c2] : memref<4xf32, #tpu.memory_space<smem>>
    %23 = vector.extract_strided_slice %12 {offsets = [0, 64], sizes = [2, 32], strides = [1, 1]} : vector<2x128xf32> to vector<2x32xf32>
    %24 = vector.broadcast %22 : f32 to vector<2x32xf32>
    %25 = arith.mulf %24, %23 : vector<2x32xf32>
    %26 = arith.addf %21, %25 : vector<2x32xf32>
    %c3 = arith.constant 3 : index
    %27 = memref.load %arg1[%c3] : memref<4xf32, #tpu.memory_space<smem>>
    %28 = vector.extract_strided_slice %12 {offsets = [0, 96], sizes = [2, 32], strides = [1, 1]} : vector<2x128xf32> to vector<2x32xf32>
    %29 = vector.broadcast %27 : f32 to vector<2x32xf32>
    %30 = arith.mulf %29, %28 : vector<2x32xf32>
    %31 = arith.addf %26, %30 : vector<2x32xf32>
    %c0_13 = arith.constant 0 : index
    %c0_14 = arith.constant 0 : index
    %32 = vector.load %arg2[%c0_13, %c0_14] : memref<1x32xf32, #tpu.memory_space<vmem>>, vector<1x32xf32>
    %33 = vector.broadcast %32 : vector<1x32xf32> to vector<2x32xf32>
    %34 = arith.addf %31, %33 : vector<2x32xf32>
    %c0_15 = arith.constant 0 : index
    %c0_16 = arith.constant 0 : index
    %35 = vector.load %arg9[%c0_15, %c0_16] : memref<2x32xf32, #tpu.memory_space<vmem>>, vector<2x32xf32>
    tpu.vector_store %arg9[%c0_15, %c0_16], %34 {strides = array<i32>} : memref<2x32xf32, #tpu.memory_space<vmem>>, vector<2x32xf32>,
    return
  }
  func.func @transform_0(%arg0: i32) -> i32 {
    %c0_i32 = arith.constant 0 : i32
    %c0_i32_0 = arith.constant 0 : i32
    return %c0_i32 : i32
  }
  func.func @transform_1(%arg0: i32) -> (i32, i32) {
    %c0_i32 = arith.constant 0 : i32
    %c0_i32_0 = arith.constant 0 : i32
    %c0_i32_1 = arith.constant 0 : i32
    return %c0_i32, %c0_i32_0 : i32, i32
  }
  func.func @transform_2(%arg0: i32) -> (i32, i32) {
    %c0_i32 = arith.constant 0 : i32
    %c0_i32_0 = arith.constant 0 : i32
    return %arg0, %c0_i32 : i32, i32
  }
  func.func @transform_3(%arg0: i32) -> (i32, i32) {
    %c0_i32 = arith.constant 0 : i32
    %c0_i32_0 = arith.constant 0 : i32
    return %arg0, %c0_i32 : i32, i32
  }
  func.func @transform_4(%arg0: i32) -> (i32, i32) {
    %c0_i32 = arith.constant 0 : i32
    %c0_i32_0 = arith.constant 0 : i32
    %c0_i32_1 = arith.constant 0 : i32
    return %c0_i32, %c0_i32_0 : i32, i32
  }
  func.func @transform_5(%arg0: i32) -> (i32, i32) {
    %c0_i32 = arith.constant 0 : i32
    %c0_i32_0 = arith.constant 0 : i32
    %c0_i32_1 = arith.constant 0 : i32
    return %c0_i32, %c0_i32_0 : i32, i32
  }
  func.func @transform_6(%arg0: i32) -> (i32, i32) {
    %c0_i32 = arith.constant 0 : i32
    %c0_i32_0 = arith.constant 0 : i32
    %c0_i32_1 = arith.constant 0 : i32
    return %c0_i32, %c0_i32_0 : i32, i32
  }
  func.func @transform_7(%arg0: i32) -> (i32, i32) {
    %c0_i32 = arith.constant 0 : i32
    %c0_i32_0 = arith.constant 0 : i32
    %c0_i32_1 = arith.constant 0 : i32
    return %c0_i32, %c0_i32_0 : i32, i32
  }
  func.func @transform_8(%arg0: i32) -> (i32, i32) {
    %c0_i32 = arith.constant 0 : i32
    %c0_i32_0 = arith.constant 0 : i32
    return %arg0, %c0_i32 : i32, i32
  }
}

</mosaic_0001>

<bundles_post_ra>
// kernel: tpu_custom_call.1
= control target key start
LH: loop header
LB: loop body
LE: loop exit
PB: predicated region body
PF: predicated region fallthrough
CT: control target
= control target key end

     0   :  { %13 = vsyncpa [#allocation5], 0  ;;  %s562_s0 = inlined_call_operand.hbm [shape: f32[4], index: 0, kind: input, shape index: {}]   ;;  %s563_s1 = inlined_call_operand.vmem [shape: f32[1,32], index: 1, kind: input, shape index: {}]   ;;  %s564_s2 = inlined_call_operand.vmem [shape: f32[2,32], index: 2, kind: input, shape index: {}]   ;;  %s565_s3 = inlined_call_operand.vmem [shape: f32[2,20], index: 3, kind: input, shape index: {}]   ;;  %s566_s4 = inlined_call_operand.hbm [shape: f32[32,128], index: 4, kind: input, shape index: {}]   ;;  %s567_s5 = inlined_call_operand.hbm [shape: f32[20,128], index: 5, kind: input, shape index: {}]   ;;  %s568_s6 = inlined_call_operand.vmem [shape: f32[1,128], index: 6, kind: input, shape index: {}]   ;;  %s569_s7 = inlined_call_operand.vmem [shape: f32[1,128], index: 7, kind: input, shape index: {}]   ;;  %s570_s8 = inlined_call_operand.hbm [shape: f32[2,32], index: 8, kind: output, shape index: {}]  }
   0x1   :  { %14 = vsyncpa [#allocation3], 0 }
   0x2   :  { %15 = vsyncpa [#allocation8], 0 }
   0x3   :  { %16 = vsyncpa [#allocation4], 0  ;;  %s358_s29 = scalar_lea.hbm %s562_s0, 16 }
   0x4   :  { %p359_p0 = scmp.ne.s32.totalorder %s562_s0, %s358_s29  ;;  %p362_p1 = scmp.lt.u32.totalorder %s358_s29, %s562_s0 }
   0x6   :  { %p364_p2 = pnand %p362_p1, %p359_p0 }
   0x8   :  { %367 = shalt.err (!%p364_p2)
}
   0x9   :  { %s442_s12 = smov [#allocation2]   ;;  %s443_s15 = smov [#allocation6]  }
   0xa   :  { %24 = dma.hbm_to_smem %s562_s0, 16, %s442_s12, [#allocation5]  }
   0xb   :  { %s36_s16 = sshll.u32 %s443_s15, 4  ;;  %s368_s19 = scalar_lea.hbm %s566_s4, 512  ;;  %s37_s16 = int_to_ptr.vmem [resolvable:$true] %s36_s16 }
   0xc   :  { %p369_p3 = scmp.ne.s32.totalorder %s566_s4, %s368_s19  ;;  %p372_p4 = scmp.lt.u32.totalorder %s368_s19, %s566_s4 }
   0xe   :  { %p374_p5 = pnand %p372_p4, %p369_p3 }
  0x10   :  { %377 = shalt.err (!%p374_p5)
}
  0x11   :  { %s378_s24 = scalar_lea.vmem %s37_s16, 512  ;;  %p383_p7 = scmp.lt.s32.totalorder %s37_s16, %s37_s16 }
  0x12   :  { %p379_p6 = scmp.ne.s32.totalorder %s37_s16, %s378_s24  ;;  %p384_p8 = scmp.lt.s32.totalorder %s378_s24, %s378_s24 }
  0x14   :  { %p385_p9 = por %p384_p8, %p383_p7 }
  0x16   :  { %p386_p10 = pnand %p385_p9, %p379_p6 }
  0x18   :  { %389 = shalt.err (!%p386_p10)
}
  0x19   :  { %s444_s0 = smov 128   ;;  %s445_s25 = smov 8  }
  0x1a   :  { %42 = dma.hbm_to_vmem [thread:$0]  %s566_s4, 512, %s37_s16, [#allocation3], %s444_s0, %s444_s0, %s445_s25  }
  0x1b   :  { %s446_s28 = smov [#allocation7]   ;;  %s390_s10 = scalar_lea.hbm %s567_s5, 384 }
  0x1c   :  { %s48_s29 = sshll.u32 %s446_s28, 4  ;;  %p391_p11 = scmp.ne.s32.totalorder %s567_s5, %s390_s10  ;;  %s49_s29 = int_to_ptr.vmem [resolvable:$true] %s48_s29 }
  0x1d   :  { %p394_p12 = scmp.lt.u32.totalorder %s390_s10, %s567_s5 }
  0x1f   :  { %p396_p13 = pnand %p394_p12, %p391_p11 }
  0x21   :  { %399 = shalt.err (!%p396_p13)
}
  0x22   :  { %s400_s15 = scalar_lea.vmem %s49_s29, 384  ;;  %p405_p1 = scmp.lt.s32.totalorder %s49_s29, %s49_s29 }
  0x23   :  { %p401_p0 = scmp.ne.s32.totalorder %s49_s29, %s400_s15  ;;  %p406_p2 = scmp.lt.s32.totalorder %s400_s15, %s400_s15 }
  0x25   :  { %p407_p3 = por %p406_p2, %p405_p1 }
  0x27   :  { %p408_p4 = pnand %p407_p3, %p401_p0 }
  0x29   :  { %411 = shalt.err (!%p408_p4)
}
  0x2a   :  { %54 = dma.hbm_to_vmem [thread:$0]  %s567_s5, 384, %s49_s29, [#allocation8], %s444_s0, %s444_s0, %s445_s25  }
  0x2b   :  { %434 = dma.done.wait [#allocation5], 16  }
  0x2c   :  { %435 = vsyncadd [#allocation5], 4294967280 }
  0x2d   :  { %436 = dma.done.wait [#allocation3], 512  }
  0x2e   :  { %437 = vsyncadd [#allocation3], 4294966784 }
  0x2f   :  { %438 = dma.done.wait [#allocation8], 384  }
  0x30   :  { %439 = vsyncadd [#allocation8], 4294966912 }
  0x31   :  { %68 = sfence }
  0x32   :  { %v70_v0 = vld [vmem:[#allocation6] sm:$0xff]  ;;  %v71_v1 = vld [vmem:[#allocation6 + $0x8] sm:$0xff]  ;;  %v447_v3 = vmov 0.0|0.0   ;;  %v72_v6 = vld [vmem:[#allocation6 + $0x10] sm:$0xff]  ;;  %vm448_vm0 = vmmov 0   ;;  %v449_v9 = vmov 0.0  }
  0x33   :  { %v156_v2 = vld [vmem:[#allocation7] sm:$0xff]  ;;  %337 = vmatprep.subr.bf16.mxu0 %v447_v3  ;;  %v338_v4 = vpack.c.bf16 %v71_v1, %v70_v0  ;;  %343 = vmatprep.subr.bf16.mxu1 %v447_v3  ;;  %v157_v5 = vld [vmem:[#allocation7 + $0x8] sm:$0xff]  ;;  %v73_v7 = vld [vmem:[#allocation6 + $0x18] sm:$0xff]  ;;  %vm170_vm1 = vcmask 1043456   ;;  %vm166_vm2 = vcmask 162816   ;;  %vm81_vm3 = vcmask 261120  }
  0x34   :  { %v344_v8 = vpack.c.bf16 %v157_v5, %v156_v2  ;;  %334 = vmatprep.mubr.msk.f32.mxu1 %vm448_vm0, %v449_v9  ;;  %325 = vmatprep.mubr.msk.f32.mxu0 %vm448_vm0, %v449_v9  ;;  %v341_v10 = vpack.c.bf16 %v73_v7, %v72_v6  ;;  %v158_v11 = vld [vmem:[#allocation7 + $0x10] sm:$0xf]  ;;  %s306_s20 = sld [smem:[#allocation2 + $0x3]]  ;;  %s304_s21 = sld [smem:[#allocation2 + $0x1]]  ;;  %vm280_vm4 = vcmask 254976  }
  0x35   :  { %339 = vmatpush3.bf16.msra.mxu0 %v338_v4  ;;  %v155_v12 = vld [vmem:[%s565_s3] sm:$0x3]  ;;  %s305_s3 = sld [smem:[#allocation2 + $0x2]]  ;;  %s452_s25 = smov 64  }
  0x36   :  { %345 = vmatpush3.bf16.msra.mxu1 %v344_v8  ;;  %340 = vmatprep.subr.bf16.mxu0 %v447_v3  ;;  %v69_v13 = vld [vmem:[%s564_s2] sm:$0x3]  ;;  %s450_s2 = smov 32   ;;  %s453_s28 = smov [#allocation9]  }
  0x37   :  { %332 = vmatprep.subr.mxu1 %v449_v9  ;;  %v301_v14 = vld [vmem:[%s569_s7] ss:$0 sm:$0xff]  ;;  %s451_s7 = smov 96   ;;  %s288_s29 = sshll.u32 %s453_s28, 4  ;;  %s289_s29 = int_to_ptr.vmem [resolvable:$true] %s288_s29 }
  0x38   :  { %v299_v15 = vld [vmem:[%s568_s6] ss:$0 sm:$0xff]  ;;  %s245_s6 = sld [smem:[#allocation2]]  ;;  %s412_s30 = scalar_lea.vmem %s289_s29, 32 }
  0x39   :  { %342 = vmatpush3.bf16.msra.mxu0 %v341_v10  ;;  %v307_v36 = vld [vmem:[%s563_s1] ss:$0 sm:$0xff]  ;;  %p413_p5 = scmp.ne.s32.totalorder %s289_s29, %s412_s30  ;;  %p417_p6 = scmp.lt.s32.totalorder %s289_s29, %s289_s29 }
  0x3a   :  { %333 = vmatpush3.msk.msra.mxu1 %vm170_vm1, %v158_v11  ;;  %v265_v22 = vstv %s306_s20  ;;  %v249_v23 = vstv %s304_s21  ;;  %p418_p7 = scmp.lt.s32.totalorder %s412_s30, %s412_s30 }
  0x3b   :  { %335 = vmatmul.mubr.msk.f32.vlgmr.msra.gmra.mrb[0].mxu1 %vm166_vm2, %v155_v12  ;;  %v257_v27 = vstv %s305_s3 }
  0x3c   :  { %326 = vmatmul.mubr.msk.f32.vlgmr.msra.gmra.mrb[0].mxu0 %vm81_vm3, %v69_v13  ;;  %p419_p8 = por %p418_p7, %p417_p6 }
  0x3e   :  { %v246_v29 = vstv %s245_s6  ;;  %p420_p9 = pnand %p419_p8, %p413_p5 }
 0x10e   :  { %v240_v16 = vpop.f32.mrb[0].mxu1 }
 0x10f   :  { %v241_v17 = vadd.f32 %v301_v14, %v240_v16  ;;  %v151_v18 = vpop.f32.mrb[0].mxu0  ;;  %v336_v19 = vpop.f32.mrb[1].mxu1 }
 0x110   :  { %v152_v20 = vadd.f32 %v299_v15, %v151_v18  ;;  %v327_v21 = vpop.f32.mrb[1].mxu0 }
 0x112   :  { %v244_v24 = vmul.f32 %v241_v17, %v152_v20 }
 0x114   :  { %v266_v25 = vmul.f32 %v265_v22, %v244_v24  ;;  %v250_v26 = vmul.f32 %v249_v23, %v244_v24  ;;  %v258_v28 = vmul.f32 %v257_v27, %v244_v24  ;;  %v247_v31 = vmul.f32 %v246_v29, %v244_v24 }
 0x116   :  { %268 = vrot.lane.b32.xlu1 %v266_v25, %s450_s2  ;;  %252 = vrot.lane.b32.xlu0 %v250_v26, %s451_s7 }
 0x11a   :  { %260 = vrot.lane.b32.xlu0 %v258_v28, %s452_s25 }
 0x188   :  { %v253_v30 = vpop.permute.xlu0 %252  ;;  %v269_v35 = vpop.permute.xlu1 %268 }
 0x189   :  { %v255_v32 = vadd.f32 %v253_v30, %v247_v31 }
 0x18c   :  { %v261_v33 = vpop.permute.xlu0 %260 }
 0x18d   :  { %v263_v34 = vadd.f32 %v261_v33, %v255_v32 }
 0x18f   :  { %v271_v37 = vadd.f32 %v269_v35, %v263_v34 }
 0x191   :  { %v279_v38 = vadd.f32 %v307_v36, %v271_v37 }
 0x193   :  { %281 = vst.msk [vmem:[#allocation9] sm:$0x3] %vm280_vm4, %v279_v38 }
 0x194   :  { %423 = shalt.err (!%p420_p9)
}
 0x195   :  { %s424_s11 = scalar_lea.hbm %s570_s8, 32 }
 0x196   :  { %p425_p10 = scmp.ne.s32.totalorder %s570_s8, %s424_s11  ;;  %p428_p11 = scmp.lt.u32.totalorder %s424_s11, %s570_s8 }
 0x198   :  { %p430_p12 = pnand %p428_p11, %p425_p10 }
 0x19a   :  { %433 = shalt.err (!%p430_p12)
}
 0x19b   :  { %291 = dma.vmem_to_hbm [thread:$0]  %s289_s29, 32, %s570_s8, [#allocation4]  }
 0x19c   :  { %440 = dma.done.wait [#allocation4], 32  }
 0x19d   :  { %441 = vsyncadd [#allocation4], 4294967264 }
 0x19e   :  { %295 = vsyncpa [#allocation3], 1 }
 0x19f   :  { %296 = vsyncpa [#allocation8], 1 }
 0x1a0   :  { %297 = vsyncpa [#allocation4], 1 }
 0x1a1   :  { %298 = vsyncpa [#allocation5], 1 }

</bundles_post_ra>
